<compile_context>
chip_gen: v7x
topology: tpu7x:2x2x1
jax: 0.10.0
libtpu: 0.0.40
codegen_flags: <defaults>
</compile_context>

<pallas_src>
import functools

import jax
import jax.numpy as jnp
from jax.experimental import pallas as pl
from jax.experimental.pallas import tpu as pltpu


def _round_up(x, m):
    return ((x + m - 1) // m) * m


def _tpu_limits():
    """Best-effort (num_tensorcores, vmem_capacity_bytes) with safe fallbacks."""
    vmem_bytes = 64 * 1024 * 1024          # conservative default (v7x-sized)
    num_cores = 2                          # safe: extra core index just serializes
    try:
        info = pltpu.get_tpu_info()
        v = getattr(info, "vmem_capacity_bytes", None)
        if isinstance(v, int) and v > 0:
            vmem_bytes = int(v)
        for name in ("num_cores", "core_count", "num_tensorcores",
                     "tensorcores_per_chip"):
            c = getattr(info, name, None)
            if isinstance(c, int) and c > 0:
                num_cores = int(c)
                break
    except Exception:
        pass
    return num_cores, vmem_bytes


def _distill_kernel(s_ref, t_ref, kl_ref, mse_ref, kl_acc, mse_acc, *, inv_temp):
    b = pl.program_id(1)
    si = pl.program_id(2)
    nb = pl.num_programs(1)
    ns = pl.num_programs(2)

    # Reset this core's per-pixel accumulators at the start of its pass.
    @pl.when(jnp.logical_and(b == 0, si == 0))
    def _():
        kl_acc[...] = jnp.zeros_like(kl_acc)
        mse_acc[...] = jnp.zeros_like(mse_acc)

    s = s_ref[...].astype(jnp.float32)          # (bb, C, hw_tile)
    t = t_ref[...].astype(jnp.float32)          # (bb, C, hw_tile)

    s_scaled = s * inv_temp
    t_scaled = t * inv_temp

    # log-sum-exp over the class axis (axis=1) for student and teacher.
    s_max = jnp.max(s_scaled, axis=1, keepdims=True)
    s_lse = jnp.log(jnp.sum(jnp.exp(s_scaled - s_max), axis=1, keepdims=True)) + s_max

    t_max = jnp.max(t_scaled, axis=1, keepdims=True)
    t_exp = jnp.exp(t_scaled - t_max)
    t_z = jnp.sum(t_exp, axis=1, keepdims=True)
    t_lse = jnp.log(t_z) + t_max
    inv_tz = 1.0 / t_z                          # one exact divide per pixel

    # KL per pixel: sum_C t_sm*(t_log_sm - s_log_sm)
    #   = (1/t_z) * sum_C t_exp*(t_scaled - s_scaled) + (s_lse - t_lse)
    kl_num = jnp.sum(t_exp * (t_scaled - s_scaled), axis=1, keepdims=True)
    kl_pix = inv_tz * kl_num + (s_lse - t_lse)              # (bb, 1, hw_tile)

    diff = s - t
    mse_pix = jnp.sum(diff * diff, axis=1, keepdims=True)   # (bb, 1, hw_tile)

    # Accumulate only per-pixel rows (no (C, hw_tile) RMW traffic).
    kl_acc[...] = kl_acc[...] + jnp.sum(kl_pix, axis=0)     # (1, hw_tile)
    mse_acc[...] = mse_acc[...] + jnp.sum(mse_pix, axis=0)  # (1, hw_tile)

    # Final reduction + write of this core's partial sums (once per core).
    @pl.when(jnp.logical_and(b == nb - 1, si == ns - 1))
    def _():
        kl_ref[...] = jnp.reshape(jnp.sum(kl_acc[...]), (1, 1))
        mse_ref[...] = jnp.reshape(jnp.sum(mse_acc[...]), (1, 1))


def distill_loss_with_pixel(student_pred, teacher_pred, *, temperature=1.0,
                            loss_weight=1.0, pixel_weight=1.0,
                            hw_tile=None, fold_batch=True):
    """Pallas port of DistillLossWithPixel.forward.  Inputs are NCHW.

    Feed bf16 logits to halve HBM traffic (compute stays f32 in-kernel).
    `hw_tile`/`fold_batch` are testing overrides; by default tiles are sized
    automatically from the detected VMEM capacity.
    """
    assert student_pred.shape == teacher_pred.shape
    B, C, H, W = student_pred.shape
    HW = H * W
    s = student_pred.reshape(B, C, HW)
    t = teacher_pred.reshape(B, C, HW)

    num_cores, vmem_cap = _tpu_limits()
    # Scoped-VMEM limit: 96 MiB on 128-MiB parts (v5e/v6e), 48 MiB on v7x.
    vmem_limit = min(96 * 1024 * 1024, (vmem_cap * 3) // 4)
    # Tile budget with 2x safety factor for in-body f32 temporaries.
    budget = vmem_limit // 2

    bytes_in = jnp.dtype(student_pred.dtype).itemsize
    # Per (b, c, column) element estimate:
    #   2 inputs x 2 pipeline buffers x bytes_in + ~8 f32 working temporaries.
    per_elem = 4 * bytes_in + 32

    # Fold the batch into the block when even a minimum-width tile fits.
    bb = B if (fold_batch and B * C * 128 * per_elem <= budget) else 1
    nb = B // bb

    if hw_tile is None:
        max_cols = max(128, (budget // (bb * C * per_elem)) // 128 * 128)
    else:
        max_cols = max(128, _round_up(int(hw_tile), 128))
    hw_tile = min(max_cols, _round_up(HW, 128))

    ns = pl.cdiv(HW, hw_tile)                   # number of spatial tiles
    nc = max(1, min(num_cores, ns))             # core-parallel axis
    ns = _round_up(ns, nc)
    ns_per_core = ns // nc
    hw_padded = ns * hw_tile
    if hw_padded != HW:
        pad = hw_padded - HW
        # Identical zero padding of student & teacher contributes 0 to KL & MSE.
        s = jnp.pad(s, ((0, 0), (0, 0), (0, pad)))
        t = jnp.pad(t, ((0, 0), (0, 0), (0, pad)))

    kernel = functools.partial(_distill_kernel, inv_temp=1.0 / float(temperature))

    in_map = lambda c, b, si: (b, 0, c * ns_per_core + si)
    out_map = lambda c, b, si: (c, 0)

    kl_part, mse_part = pl.pallas_call(
        kernel,
        out_shape=(
            jax.ShapeDtypeStruct((nc, 1), jnp.float32),
            jax.ShapeDtypeStruct((nc, 1), jnp.float32),
        ),
        grid_spec=pltpu.PrefetchScalarGridSpec(
            num_scalar_prefetch=0,
            grid=(nc, nb, ns_per_core),
            in_specs=[
                pl.BlockSpec((bb, C, hw_tile), in_map),
                pl.BlockSpec((bb, C, hw_tile), in_map),
            ],
            out_specs=[
                pl.BlockSpec((1, 1), out_map),
                pl.BlockSpec((1, 1), out_map),
            ],
            scratch_shapes=[
                pltpu.VMEM((1, hw_tile), jnp.float32),   # per-pixel KL acc
                pltpu.VMEM((1, hw_tile), jnp.float32),   # per-pixel MSE acc
            ],
        ),
        compiler_params=pltpu.CompilerParams(
            dimension_semantics=("parallel", "arbitrary", "arbitrary"),
            vmem_limit_bytes=int(vmem_limit),
        ),
    )(s, t)

    kl_sum = jnp.sum(kl_part)
    mse_sum = jnp.sum(mse_part)

    # kl_div reduction='batchmean' -> / B ; scaled by T**2
    class_distill_loss = (kl_sum / B) * (float(temperature) ** 2)
    # mse_loss reduction='mean' -> / total (un-padded) element count
    pixel_distill_loss = mse_sum / (B * C * HW)
    return loss_weight * class_distill_loss + pixel_weight * pixel_distill_loss


def _reference(student_pred, teacher_pred, temperature, loss_weight, pixel_weight):
    """Pure-JAX reference mirroring the PyTorch forward."""
    B = student_pred.shape[0]
    s_log = jax.nn.log_softmax(student_pred / temperature, axis=1)
    t_sm = jax.nn.softmax(teacher_pred / temperature, axis=1)
    kl = jnp.sum(t_sm * (jnp.log(t_sm) - s_log)) / B
    class_loss = kl * temperature ** 2
    pixel_loss = jnp.mean((student_pred - teacher_pred) ** 2)
    return loss_weight * class_loss + pixel_weight * pixel_loss


if __name__ == "__main__":
    temperature = 2.0
    loss_weight = 1.0
    pixel_weight = 1.0

    key = jax.random.PRNGKey(0)
    k1, k2, k3, k4 = jax.random.split(key, 4)

    # Case 1: small shape, auto tile sizing, batch folded into the block.
    B, C, H, W = 2, 4, 16, 16
    s1 = jax.random.normal(k1, (B, C, H, W), dtype=jnp.float32)
    t1 = jax.random.normal(k2, (B, C, H, W), dtype=jnp.float32)
    out1 = distill_loss_with_pixel(
        s1, t1, temperature=temperature,
        loss_weight=loss_weight, pixel_weight=pixel_weight)
    out1 = jax.block_until_ready(out1)
    ref1 = _reference(s1, t1, temperature, loss_weight, pixel_weight)
    assert jnp.allclose(out1, ref1, rtol=1e-4, atol=1e-5), (out1, ref1)

    # Case 2: forces multiple spatial tiles + zero padding + per-batch blocks
    # + (when available) the 2-way core split.
    B2, C2, H2, W2 = 2, 4, 24, 24            # HW = 576
    s2 = jax.random.normal(k3, (B2, C2, H2, W2), dtype=jnp.float32)
    t2 = jax.random.normal(k4, (B2, C2, H2, W2), dtype=jnp.float32)
    out2 = distill_loss_with_pixel(
        s2, t2, temperature=temperature,
        loss_weight=loss_weight, pixel_weight=pixel_weight,
        hw_tile=128, fold_batch=False)
    out2 = jax.block_until_ready(out2)
    ref2 = _reference(s2, t2, temperature, loss_weight, pixel_weight)
    assert jnp.allclose(out2, ref2, rtol=1e-4, atol=1e-5), (out2, ref2)

    print("KERNEL_OK")
</pallas_src>

<mosaic_0001>
module attributes {stable_mosaic.version = 11 : i64} {
  func.func @_distill_kernel(%arg0: i32, %arg1: i32, %arg2: i32, %arg3: memref<2x4x256xf32, #tpu.memory_space<vmem>>, %arg4: memref<2x4x256xf32, #tpu.memory_space<vmem>>, %arg5: memref<1x1xf32, #tpu.memory_space<vmem>>, %arg6: memref<1x1xf32, #tpu.memory_space<vmem>>, %arg7: memref<1x256xf32, #tpu.memory_space<vmem>>, %arg8: memref<1x256xf32, #tpu.memory_space<vmem>>) attributes {dimension_semantics = [#tpu.dimension_semantics<parallel>, #tpu.dimension_semantics<arbitrary>, #tpu.dimension_semantics<arbitrary>], iteration_bounds = array<i64: 1, 1, 1>, scalar_prefetch = 0 : i64, scratch_operands = 2 : i64, tpu.core_type = #tpu.core_type<tc>, window_params = [{transform_indices = @transform_0, window_bounds = array<i64: 2, 4, 256>}, {transform_indices = @transform_1, window_bounds = array<i64: 2, 4, 256>}, {transform_indices = @transform_2, window_bounds = array<i64: 1, 1>}, {transform_indices = @transform_3, window_bounds = array<i64: 1, 1>}]} {
    %c0_i32 = arith.constant 0 : i32
    %0 = arith.cmpi eq, %arg1, %c0_i32 : i32
    %c0_i32_0 = arith.constant 0 : i32
    %1 = arith.cmpi eq, %arg2, %c0_i32_0 : i32
    %2 = arith.andi %0, %1 : i1
    %3 = arith.extui %2 : i1 to i32
    %c0_i32_1 = arith.constant 0 : i32
    %4 = arith.cmpi ne, %3, %c0_i32_1 : i32
    scf.if %4 {
      %cst_28 = arith.constant 0.000000e+00 : f32
      %55 = vector.broadcast %cst_28 : f32 to vector<1x256xf32>
      %c0_29 = arith.constant 0 : index
      %c0_30 = arith.constant 0 : index
      %56 = vector.load %arg7[%c0_29, %c0_30] : memref<1x256xf32, #tpu.memory_space<vmem>>, vector<1x256xf32>
      tpu.vector_store %arg7[%c0_29, %c0_30], %55 {strides = array<i32>} : memref<1x256xf32, #tpu.memory_space<vmem>>, vector<1x256xf32>,
      %cst_31 = arith.constant 0.000000e+00 : f32
      %57 = vector.broadcast %cst_31 : f32 to vector<1x256xf32>
      %c0_32 = arith.constant 0 : index
      %c0_33 = arith.constant 0 : index
      %58 = vector.load %arg8[%c0_32, %c0_33] : memref<1x256xf32, #tpu.memory_space<vmem>>, vector<1x256xf32>
      tpu.vector_store %arg8[%c0_32, %c0_33], %57 {strides = array<i32>} : memref<1x256xf32, #tpu.memory_space<vmem>>, vector<1x256xf32>,
    } else {
    }
    %c0 = arith.constant 0 : index
    %c0_2 = arith.constant 0 : index
    %c0_3 = arith.constant 0 : index
    %5 = vector.load %arg3[%c0, %c0_2, %c0_3] : memref<2x4x256xf32, #tpu.memory_space<vmem>>, vector<2x4x256xf32>
    %c0_4 = arith.constant 0 : index
    %c0_5 = arith.constant 0 : index
    %c0_6 = arith.constant 0 : index
    %6 = vector.load %arg4[%c0_4, %c0_5, %c0_6] : memref<2x4x256xf32, #tpu.memory_space<vmem>>, vector<2x4x256xf32>
    %cst = arith.constant 5.000000e-01 : f32
    %7 = vector.broadcast %cst : f32 to vector<2x4x256xf32>
    %8 = arith.mulf %5, %7 : vector<2x4x256xf32>
    %cst_7 = arith.constant 5.000000e-01 : f32
    %9 = vector.broadcast %cst_7 : f32 to vector<2x4x256xf32>
    %10 = arith.mulf %6, %9 : vector<2x4x256xf32>
    %cst_8 = arith.constant dense<0xFF800000> : vector<2x256xf32>
    %11 = vector.multi_reduction <maximumf>, %8, %cst_8 [1] : vector<2x4x256xf32> to vector<2x256xf32>
    %12 = vector.shape_cast %11 : vector<2x256xf32> to vector<2x1x256xf32>
    %13 = vector.broadcast %12 : vector<2x1x256xf32> to vector<2x4x256xf32>
    %14 = arith.subf %8, %13 : vector<2x4x256xf32>
    %15 = math.exp %14 : vector<2x4x256xf32>
    %cst_9 = arith.constant dense<0.000000e+00> : vector<2x256xf32>
    %16 = vector.multi_reduction <add>, %15, %cst_9 [1] : vector<2x4x256xf32> to vector<2x256xf32>
    %17 = vector.shape_cast %16 : vector<2x256xf32> to vector<2x1x256xf32>
    %18 = math.log %17 : vector<2x1x256xf32>
    %19 = arith.addf %18, %12 : vector<2x1x256xf32>
    %cst_10 = arith.constant dense<0xFF800000> : vector<2x256xf32>
    %20 = vector.multi_reduction <maximumf>, %10, %cst_10 [1] : vector<2x4x256xf32> to vector<2x256xf32>
    %21 = vector.shape_cast %20 : vector<2x256xf32> to vector<2x1x256xf32>
    %22 = vector.broadcast %21 : vector<2x1x256xf32> to vector<2x4x256xf32>
    %23 = arith.subf %10, %22 : vector<2x4x256xf32>
    %24 = math.exp %23 : vector<2x4x256xf32>
    %cst_11 = arith.constant dense<0.000000e+00> : vector<2x256xf32>
    %25 = vector.multi_reduction <add>, %24, %cst_11 [1] : vector<2x4x256xf32> to vector<2x256xf32>
    %26 = vector.shape_cast %25 : vector<2x256xf32> to vector<2x1x256xf32>
    %27 = math.log %26 : vector<2x1x256xf32>
    %28 = arith.addf %27, %21 : vector<2x1x256xf32>
    %cst_12 = arith.constant 1.000000e+00 : f32
    %29 = vector.broadcast %cst_12 : f32 to vector<2x1x256xf32>
    %30 = arith.divf %29, %26 : vector<2x1x256xf32>
    %31 = arith.subf %10, %8 : vector<2x4x256xf32>
    %32 = arith.mulf %24, %31 : vector<2x4x256xf32>
    %cst_13 = arith.constant dense<0.000000e+00> : vector<2x256xf32>
    %33 = vector.multi_reduction <add>, %32, %cst_13 [1] : vector<2x4x256xf32> to vector<2x256xf32>
    %34 = vector.shape_cast %33 : vector<2x256xf32> to vector<2x1x256xf32>
    %35 = arith.mulf %30, %34 : vector<2x1x256xf32>
    %36 = arith.subf %19, %28 : vector<2x1x256xf32>
    %37 = arith.addf %35, %36 : vector<2x1x256xf32>
    %38 = arith.subf %5, %6 : vector<2x4x256xf32>
    %39 = arith.mulf %38, %38 : vector<2x4x256xf32>
    %cst_14 = arith.constant dense<0.000000e+00> : vector<2x256xf32>
    %40 = vector.multi_reduction <add>, %39, %cst_14 [1] : vector<2x4x256xf32> to vector<2x256xf32>
    %41 = vector.shape_cast %40 : vector<2x256xf32> to vector<2x1x256xf32>
    %c0_15 = arith.constant 0 : index
    %c0_16 = arith.constant 0 : index
    %42 = vector.load %arg7[%c0_15, %c0_16] : memref<1x256xf32, #tpu.memory_space<vmem>>, vector<1x256xf32>
    %cst_17 = arith.constant dense<0.000000e+00> : vector<1x256xf32>
    %43 = vector.multi_reduction <add>, %37, %cst_17 [0] : vector<2x1x256xf32> to vector<1x256xf32>
    %44 = arith.addf %42, %43 : vector<1x256xf32>
    %c0_18 = arith.constant 0 : index
    %c0_19 = arith.constant 0 : index
    %45 = vector.load %arg7[%c0_18, %c0_19] : memref<1x256xf32, #tpu.memory_space<vmem>>, vector<1x256xf32>
    tpu.vector_store %arg7[%c0_18, %c0_19], %44 {strides = array<i32>} : memref<1x256xf32, #tpu.memory_space<vmem>>, vector<1x256xf32>,
    %c0_20 = arith.constant 0 : index
    %c0_21 = arith.constant 0 : index
    %46 = vector.load %arg8[%c0_20, %c0_21] : memref<1x256xf32, #tpu.memory_space<vmem>>, vector<1x256xf32>
    %cst_22 = arith.constant dense<0.000000e+00> : vector<1x256xf32>
    %47 = vector.multi_reduction <add>, %41, %cst_22 [0] : vector<2x1x256xf32> to vector<1x256xf32>
    %48 = arith.addf %46, %47 : vector<1x256xf32>
    %c0_23 = arith.constant 0 : index
    %c0_24 = arith.constant 0 : index
    %49 = vector.load %arg8[%c0_23, %c0_24] : memref<1x256xf32, #tpu.memory_space<vmem>>, vector<1x256xf32>
    tpu.vector_store %arg8[%c0_23, %c0_24], %48 {strides = array<i32>} : memref<1x256xf32, #tpu.memory_space<vmem>>, vector<1x256xf32>,
    %c0_i32_25 = arith.constant 0 : i32
    %50 = arith.cmpi eq, %arg1, %c0_i32_25 : i32
    %c0_i32_26 = arith.constant 0 : i32
    %51 = arith.cmpi eq, %arg2, %c0_i32_26 : i32
    %52 = arith.andi %50, %51 : i1
    %53 = arith.extui %52 : i1 to i32
    %c0_i32_27 = arith.constant 0 : i32
    %54 = arith.cmpi ne, %53, %c0_i32_27 : i32
    scf.if %54 {
      %c0_28 = arith.constant 0 : index
      %c0_29 = arith.constant 0 : index
      %55 = vector.load %arg7[%c0_28, %c0_29] : memref<1x256xf32, #tpu.memory_space<vmem>>, vector<1x256xf32>
      %56 = vector.shape_cast %55 : vector<1x256xf32> to vector<1x1x256xf32>
      %cst_30 = arith.constant dense<0.000000e+00> : vector<1xf32>
      %57 = vector.multi_reduction <add>, %56, %cst_30 [1, 2] : vector<1x1x256xf32> to vector<1xf32>
      %58 = vector.shape_cast %57 : vector<1xf32> to vector<1x1x1xf32>
      %59 = vector.extract %58[0, 0, 0] : f32 from vector<1x1x1xf32>
      %60 = vector.broadcast %59 : f32 to vector<1x1xf32>
      %c0_31 = arith.constant 0 : index
      %c0_32 = arith.constant 0 : index
      %61 = vector.load %arg5[%c0_31, %c0_32] : memref<1x1xf32, #tpu.memory_space<vmem>>, vector<1x1xf32>
      tpu.vector_store %arg5[%c0_31, %c0_32], %60 {strides = array<i32>} : memref<1x1xf32, #tpu.memory_space<vmem>>, vector<1x1xf32>,
      %c0_33 = arith.constant 0 : index
      %c0_34 = arith.constant 0 : index
      %62 = vector.load %arg8[%c0_33, %c0_34] : memref<1x256xf32, #tpu.memory_space<vmem>>, vector<1x256xf32>
      %63 = vector.shape_cast %62 : vector<1x256xf32> to vector<1x1x256xf32>
      %cst_35 = arith.constant dense<0.000000e+00> : vector<1xf32>
      %64 = vector.multi_reduction <add>, %63, %cst_35 [1, 2] : vector<1x1x256xf32> to vector<1xf32>
      %65 = vector.shape_cast %64 : vector<1xf32> to vector<1x1x1xf32>
      %66 = vector.extract %65[0, 0, 0] : f32 from vector<1x1x1xf32>
      %67 = vector.broadcast %66 : f32 to vector<1x1xf32>
      %c0_36 = arith.constant 0 : index
      %c0_37 = arith.constant 0 : index
      %68 = vector.load %arg6[%c0_36, %c0_37] : memref<1x1xf32, #tpu.memory_space<vmem>>, vector<1x1xf32>
      tpu.vector_store %arg6[%c0_36, %c0_37], %67 {strides = array<i32>} : memref<1x1xf32, #tpu.memory_space<vmem>>, vector<1x1xf32>,
    } else {
    }
    return
  }
  func.func @transform_0(%arg0: i32, %arg1: i32, %arg2: i32) -> (i32, i32, i32) {
    %c1_i32 = arith.constant 1 : i32
    %0 = arith.muli %arg0, %c1_i32 : i32
    %1 = arith.addi %0, %arg2 : i32
    %c0_i32 = arith.constant 0 : i32
    %c0_i32_0 = arith.constant 0 : i32
    return %arg1, %c0_i32, %1 : i32, i32, i32
  }
  func.func @transform_1(%arg0: i32, %arg1: i32, %arg2: i32) -> (i32, i32, i32) {
    %c1_i32 = arith.constant 1 : i32
    %0 = arith.muli %arg0, %c1_i32 : i32
    %1 = arith.addi %0, %arg2 : i32
    %c0_i32 = arith.constant 0 : i32
    %c0_i32_0 = arith.constant 0 : i32
    return %arg1, %c0_i32, %1 : i32, i32, i32
  }
  func.func @transform_2(%arg0: i32, %arg1: i32, %arg2: i32) -> (i32, i32) {
    %c0_i32 = arith.constant 0 : i32
    %c0_i32_0 = arith.constant 0 : i32
    return %arg0, %c0_i32 : i32, i32
  }
  func.func @transform_3(%arg0: i32, %arg1: i32, %arg2: i32) -> (i32, i32) {
    %c0_i32 = arith.constant 0 : i32
    %c0_i32_0 = arith.constant 0 : i32
    return %arg0, %c0_i32 : i32, i32
  }
}

</mosaic_0001>

<bundles_post_ra>
// kernel: tpu_custom_call.1
= control target key start
LH: loop header
LB: loop body
LE: loop exit
PB: predicated region body
PF: predicated region fallthrough
CT: control target
= control target key end

     0   :  { %9 = vsyncpa [#allocation5], 0  ;;  %s838_s0 = inlined_call_operand.hbm [shape: f32[2,4,256], index: 0, kind: input, shape index: {}]   ;;  %s839_s1 = inlined_call_operand.hbm [shape: f32[2,4,256], index: 1, kind: input, shape index: {}]   ;;  %s840_s2 = inlined_call_operand.hbm [shape: f32[1,1], index: 2, kind: output, shape index: {0}]   ;;  %s841_s3 = inlined_call_operand.hbm [shape: f32[1,1], index: 3, kind: output, shape index: {1}]  }
   0x1   :  { %10 = vsyncpa [#allocation8], 0 }
   0x2   :  { %11 = vsyncpa [#allocation6], 0 }
   0x3   :  { %12 = vsyncpa [#allocation11], 0  ;;  %s636_s12 = smov [#allocation4]   ;;  %s540_s16 = scalar_lea.hbm %s838_s0, 256 }
   0x4   :  { %s22_s13 = sshll.u32 %s636_s12, 4  ;;  %p541_p0 = scmp.ne.s32.totalorder %s838_s0, %s540_s16  ;;  %s23_s13 = int_to_ptr.vmem [resolvable:$true] %s22_s13 }
   0x5   :  { %p544_p1 = scmp.lt.u32.totalorder %s540_s16, %s838_s0 }
   0x7   :  { %p546_p2 = pnand %p544_p1, %p541_p0 }
   0x9   :  { %549 = shalt.err (!%p546_p2)
}
   0xa   :  { %s550_s21 = scalar_lea.vmem %s23_s13, 256  ;;  %p555_p4 = scmp.lt.s32.totalorder %s23_s13, %s23_s13 }
   0xb   :  { %p551_p3 = scmp.ne.s32.totalorder %s23_s13, %s550_s21  ;;  %p556_p5 = scmp.lt.s32.totalorder %s550_s21, %s550_s21 }
   0xd   :  { %p557_p6 = por %p556_p5, %p555_p4 }
   0xf   :  { %p558_p7 = pnand %p557_p6, %p551_p3 }
  0x11   :  { %561 = shalt.err (!%p558_p7)
}
  0x12   :  { %s637_s22 = smov 128   ;;  %s638_s23 = smov 8  }
  0x13   :  { %28 = dma.hbm_to_vmem [thread:$0]  %s838_s0, 256, %s23_s13, [#allocation5], %s637_s22, %s637_s22, %s638_s23  }
  0x14   :  { %s639_s26 = smov [#allocation7]   ;;  %s562_s30 = scalar_lea.hbm %s839_s1, 256 }
  0x15   :  { %s38_s27 = sshll.u32 %s639_s26, 4  ;;  %p563_p8 = scmp.ne.s32.totalorder %s839_s1, %s562_s30  ;;  %s39_s27 = int_to_ptr.vmem [resolvable:$true] %s38_s27 }
  0x16   :  { %p566_p9 = scmp.lt.u32.totalorder %s562_s30, %s839_s1 }
  0x18   :  { %p568_p10 = pnand %p566_p9, %p563_p8 }
  0x1a   :  { %571 = shalt.err (!%p568_p10)
}
  0x1b   :  { %s572_s8 = scalar_lea.vmem %s39_s27, 256  ;;  %p577_p12 = scmp.lt.s32.totalorder %s39_s27, %s39_s27 }
  0x1c   :  { %p573_p11 = scmp.ne.s32.totalorder %s39_s27, %s572_s8  ;;  %p578_p13 = scmp.lt.s32.totalorder %s572_s8, %s572_s8 }
  0x1e   :  { %p579_p0 = por %p578_p13, %p577_p12 }
  0x20   :  { %p580_p1 = pnand %p579_p0, %p573_p11 }
  0x22   :  { %583 = shalt.err (!%p580_p1)
}
  0x23   :  { %44 = dma.hbm_to_vmem [thread:$0]  %s839_s1, 256, %s39_s27, [#allocation8], %s637_s22, %s637_s22, %s638_s23  }
  0x24   :  { %628 = dma.done.wait [#allocation5], 256  }
  0x25   :  { %629 = vsyncadd [#allocation5], 4294967040 }
  0x26   :  { %630 = dma.done.wait [#allocation8], 256  }
  0x27   :  { %631 = vsyncadd [#allocation8], 4294967040  ;;  %v61_v0 = vlaneseq  ;;  %v640_v2 = vmov 0.0   ;;  %v67_v3 = vld [vmem:[#allocation4] sm:$0xff]  ;;  %v68_v4 = vld [vmem:[#allocation4 + $0x8] sm:$0xff]  ;;  %vm81_vm1 = vcmask 1043456  }
  0x28   :  { %v69_v5 = vld [vmem:[#allocation7] sm:$0xff]  ;;  %v70_v6 = vld [vmem:[#allocation7 + $0x8] sm:$0xff]  ;;  %v697_v7 = vmul.f32 0.5, %v67_v3  ;;  %v699_v8 = vmul.f32 0.5, %v68_v4  ;;  %vm424_vm2 = vcmask 1040384   ;;  %s642_s1 = smov [#allocation9]  }
  0x29   :  { %vm689_vm0 = vcmp.lt.s32.totalorder %v61_v0, 256  ;;  %v701_v9 = vmul.f32 0.5, %v69_v5  ;;  %v703_v10 = vmul.f32 0.5, %v70_v6  ;;  %v322_v11 = vsub.f32 %v67_v3, %v69_v5  ;;  %s472_s10 = sshll.u32 %s642_s1, 4  ;;  %s643_s12 = smov [#allocation10]   ;;  %s473_s10 = int_to_ptr.vmem [resolvable:$true] %s472_s10 }
  0x2a   :  { %65 = vst.msk [vmem:[#allocation2] sm:$0x3] %vm689_vm0, %v640_v2  ;;  %66 = vst.msk [vmem:[#allocation3] sm:$0x3] %vm689_vm0, %v640_v2  ;;  %v323_v12 = vsub.f32 %v68_v4, %v70_v6  ;;  %v77_v13 = vcombine.high %v697_v7, %v697_v7  ;;  %v78_v14 = vcombine.high %v699_v8, %v699_v8  ;;  %v82_v15 = vsel %vm81_vm1, %v697_v7, -inf  ;;  %s482_s13 = sshll.u32 %s643_s12, 4  ;;  %p589_p3 = scmp.lt.s32.totalorder %s473_s10, %s473_s10  ;;  %s483_s13 = int_to_ptr.vmem [resolvable:$true] %s482_s13 }
  0x2b   :  { %v96_v16 = vsel %vm81_vm1, %v699_v8, -inf  ;;  %v83_v17 = vrot.slane %v82_v15, 4  ;;  %v172_v19 = vcombine.high %v701_v9, %v701_v9  ;;  %v173_v20 = vcombine.high %v703_v10, %v703_v10  ;;  %s584_s14 = scalar_lea.vmem %s473_s10, 16  ;;  %s588_s15 = scalar_lea.vmem %s473_s10, 32 }
  0x2c   :  { %v97_v18 = vrot.slane %v96_v16, 4  ;;  %v89_v21 = vsel %vm81_vm1, %v77_v13, -inf  ;;  %v103_v22 = vsel %vm81_vm1, %v78_v14, -inf  ;;  %v176_v23 = vsel %vm81_vm1, %v701_v9, -inf  ;;  %p585_p2 = scmp.ne.s32.totalorder %s473_s10, %s584_s14  ;;  %p590_p4 = scmp.lt.s32.totalorder %s588_s15, %s584_s14 }
  0x2d   :  { %v190_v24 = vsel %vm81_vm1, %v703_v10, -inf  ;;  %v84_v25 = vmax.f32 %v82_v15, %v83_v17  ;;  %v90_v26 = vrot.slane %v89_v21, 4  ;;  %v104_v28 = vrot.slane %v103_v22, 4 }
  0x2e   :  { %v98_v27 = vmax.f32 %v96_v16, %v97_v18  ;;  %v177_v29 = vrot.slane %v176_v23, 4  ;;  %v183_v30 = vsel %vm81_vm1, %v172_v19, -inf  ;;  %v191_v31 = vrot.slane %v190_v24, 4  ;;  %p591_p5 = por %p590_p4, %p589_p3 }
  0x2f   :  { %v197_v32 = vsel %vm81_vm1, %v173_v20, -inf  ;;  %v85_v33 = vrot.slane %v84_v25, 2  ;;  %v91_v34 = vmax.f32 %v89_v21, %v90_v26  ;;  %v105_v36 = vmax.f32 %v103_v22, %v104_v28 }
  0x30   :  { %v99_v35 = vrot.slane %v98_v27, 2  ;;  %v178_v37 = vmax.f32 %v176_v23, %v177_v29  ;;  %v184_v38 = vrot.slane %v183_v30, 4  ;;  %v192_v39 = vmax.f32 %v190_v24, %v191_v31  ;;  %p592_p6 = pnand %p591_p5, %p585_p2 }
  0x31   :  { %v198_v40 = vrot.slane %v197_v32, 4  ;;  %v86_v41 = vmax.f32 %v84_v25, %v85_v33  ;;  %v92_v42 = vrot.slane %v91_v34, 2  ;;  %v106_v44 = vrot.slane %v105_v36, 2 }
  0x32   :  { %v100_v43 = vmax.f32 %v98_v27, %v99_v35  ;;  %v179_v45 = vrot.slane %v178_v37, 2  ;;  %v185_v46 = vmax.f32 %v183_v30, %v184_v38  ;;  %v193_v47 = vrot.slane %v192_v39, 2 }
  0x33   :  { %v199_v48 = vmax.f32 %v197_v32, %v198_v40  ;;  %v87_v49 = vrot.slane %v86_v41, 1  ;;  %v93_v50 = vmax.f32 %v91_v34, %v92_v42  ;;  %v107_v52 = vmax.f32 %v105_v36, %v106_v44 }
  0x34   :  { %v101_v51 = vrot.slane %v100_v43, 1  ;;  %v180_v53 = vmax.f32 %v178_v37, %v179_v45  ;;  %v186_v54 = vrot.slane %v185_v46, 2  ;;  %v194_v55 = vmax.f32 %v192_v39, %v193_v47 }
  0x35   :  { %v200_v56 = vrot.slane %v199_v48, 2  ;;  %v725_v57 = vmax.f32 %v86_v41, %v87_v49  ;;  %v94_v58 = vrot.slane %v93_v50, 1  ;;  %v108_v60 = vrot.slane %v107_v52, 1 }
  0x36   :  { %v727_v59 = vmax.f32 %v100_v43, %v101_v51  ;;  %v181_v61 = vrot.slane %v180_v53, 1  ;;  %v187_v62 = vmax.f32 %v185_v46, %v186_v54  ;;  %v195_v63 = vrot.slane %v194_v55, 1 }
  0x37   :  { %v201_v2 = vmax.f32 %v199_v48, %v200_v56  ;;  %v729_v3 = vmax.f32 %v93_v50, %v94_v58  ;;  %v731_v4 = vmax.f32 %v107_v52, %v108_v60  ;;  %v324_v17 = vmul.f32 %v322_v11, %v322_v11 }
  0x38   :  { %v733_v5 = vmax.f32 %v180_v53, %v181_v61  ;;  %v188_v6 = vrot.slane %v187_v62, 1  ;;  %v735_v13 = vmax.f32 %v194_v55, %v195_v63  ;;  %v325_v18 = vmul.f32 %v323_v12, %v323_v12 }
  0x39   :  { %v202_v14 = vrot.slane %v201_v2, 1  ;;  %v114_v15 = vcombine.low %v725_v57, %v729_v3  ;;  %v115_v16 = vcombine.low %v727_v59, %v731_v4  ;;  %v328_v23 = vcombine.high %v324_v17, %v324_v17 }
  0x3a   :  { %v741_v19 = vmax.f32 %v187_v62, %v188_v6  ;;  %v329_v24 = vcombine.high %v325_v18, %v325_v18  ;;  %v332_v27 = vsel %vm81_vm1, %v324_v17, 0.0  ;;  %v346_v11 = vsel %vm81_vm1, %v325_v18, 0.0 }
  0x3b   :  { %v743_v20 = vmax.f32 %v201_v2, %v202_v14  ;;  %v118_v21 = vsub.f32 %v697_v7, %v114_v15  ;;  %v119_v22 = vsub.f32 %v699_v8, %v115_v16  ;;  %v333_v29 = vrot.slane %v332_v27, 4 }
  0x3c   :  { %v208_v25 = vcombine.low %v733_v5, %v741_v19  ;;  %v339_v30 = vsel %vm81_vm1, %v328_v23, 0.0  ;;  %v347_v34 = vrot.slane %v346_v11, 4  ;;  %v353_v36 = vsel %vm81_vm1, %v329_v24, 0.0 }
  0x3d   :  { %v209_v26 = vcombine.low %v735_v13, %v743_v20  ;;  %v120_v12 = vmul.f32 1.442695, %v118_v21  ;;  %v122_v28 = vmul.f32 1.442695, %v119_v22  ;;  %v340_v33 = vrot.slane %v339_v30, 4 }
  0x3e   :  { %v212_v31 = vsub.f32 %v701_v9, %v208_v25  ;;  %v334_v35 = vadd.f32 %v333_v29, %v332_v27  ;;  %v348_v41 = vadd.f32 %v347_v34, %v346_v11  ;;  %v354_v42 = vrot.slane %v353_v36, 4 }
  0x3f   :  { %v213_v32 = vsub.f32 %v703_v10, %v209_v26  ;;  %508 = vpow2.f32 %v120_v12  ;;  %v341_v39 = vadd.f32 %v340_v33, %v339_v30  ;;  %v641_v43 = vmov 1966171168  }
  0x40   :  { %510 = vpow2.f32 %v122_v28  ;;  %v214_v37 = vmul.f32 1.442695, %v212_v31  ;;  %v335_v40 = vrot.slane %v334_v35, 2  ;;  %v367_v44 = vunpack.c.l.s4 %v641_v43 }
  0x41   :  { %v216_v38 = vmul.f32 1.442695, %v213_v32  ;;  %v342_v45 = vrot.slane %v341_v39, 2  ;;  %v349_v47 = vrot.slane %v348_v41, 2  ;;  %v355_v48 = vadd.f32 %v354_v42, %v353_v36 }
  0x42   :  { %512 = vpow2.f32 %v214_v37  ;;  %v336_v46 = vadd.f32 %v335_v40, %v334_v35  ;;  %v758_v50 = vshrl.u32 %v61_v0, 7  ;;  %v368_v54 = vunpack.c.0.s8 %v367_v44 }
  0x43   :  { %514 = vpow2.f32 %v216_v38  ;;  %v343_v49 = vadd.f32 %v342_v45, %v341_v39  ;;  %v350_v52 = vadd.f32 %v349_v47, %v348_v41  ;;  %v356_v53 = vrot.slane %v355_v48, 2 }
  0x44   :  { %v337_v51 = vrot.slane %v336_v46, 1  ;;  %v761_v2 = vsub.s32 %v368_v54, %v758_v50  ;;  %v272_v0 = vsub.f32 %v701_v9, %v697_v7  ;;  %v273_v16 = vsub.f32 %v703_v10, %v699_v8 }
  0x45   :  { %v344_v55 = vrot.slane %v343_v49, 1  ;;  %v351_v56 = vrot.slane %v350_v52, 1  ;;  %v357_v58 = vadd.f32 %v356_v53, %v355_v48  ;;  %vm438_vm3 = vcmask 0  }
  0x46   :  { %v338_v60 = vadd.f32 %v337_v51, %v336_v46 }
  0x47   :  { %v352_v62 = vadd.f32 %v351_v56, %v350_v52  ;;  %v358_v63 = vrot.slane %v357_v58, 1  ;;  %v769_v22 = vadd.f32 %v344_v55, %v343_v49 }
  0x49   :  { %v509_v61 = vpop.eup %508  ;;  %v772_v26 = vadd.f32 %v358_v63, %v357_v58  ;;  %v774_v27 = vadd.f32 %v352_v62, %v338_v60 }
  0x4a   :  { %v511_v6 = vpop.eup %510  ;;  %v126_v14 = vcombine.high %v509_v61, %v509_v61  ;;  %v130_v15 = vsel %vm81_vm1, %v509_v61, 0.0 }
  0x4b   :  { %v127_v17 = vcombine.high %v511_v6, %v511_v6  ;;  %v131_v18 = vrot.slane %v130_v15, 4  ;;  %v144_v21 = vsel %vm81_vm1, %v511_v6, 0.0 }
  0x4c   :  { %v513_v23 = vpop.eup %512  ;;  %v137_v24 = vsel %vm81_vm1, %v126_v14, 0.0  ;;  %v145_v25 = vrot.slane %v144_v21, 4 }
  0x4d   :  { %v515_v11 = vpop.eup %514  ;;  %v132_v12 = vadd.f32 %v131_v18, %v130_v15  ;;  %v138_v28 = vrot.slane %v137_v24, 4  ;;  %v151_v29 = vsel %vm81_vm1, %v127_v17, 0.0  ;;  %v220_v30 = vcombine.high %v513_v23, %v513_v23 }
  0x4e   :  { %v146_v31 = vadd.f32 %v145_v25, %v144_v21  ;;  %v152_v32 = vrot.slane %v151_v29, 4  ;;  %v221_v33 = vcombine.high %v515_v11, %v515_v11  ;;  %v224_v34 = vsel %vm81_vm1, %v513_v23, 0.0 }
  0x4f   :  { %v133_v35 = vrot.slane %v132_v12, 2  ;;  %v139_v36 = vadd.f32 %v138_v28, %v137_v24  ;;  %v225_v37 = vrot.slane %v224_v34, 4  ;;  %v231_v38 = vsel %vm81_vm1, %v220_v30, 0.0 }
  0x50   :  { %v147_v39 = vrot.slane %v146_v31, 2  ;;  %v153_v40 = vadd.f32 %v152_v32, %v151_v29  ;;  %v232_v41 = vrot.slane %v231_v38, 4  ;;  %v238_v42 = vsel %vm81_vm1, %v515_v11, 0.0 }
  0x51   :  { %v134_v43 = vadd.f32 %v133_v35, %v132_v12  ;;  %v140_v44 = vrot.slane %v139_v36, 2  ;;  %v226_v45 = vadd.f32 %v225_v37, %v224_v34  ;;  %v239_v46 = vrot.slane %v238_v42, 4 }
  0x52   :  { %v148_v47 = vadd.f32 %v147_v39, %v146_v31  ;;  %v154_v48 = vrot.slane %v153_v40, 2  ;;  %v233_v49 = vadd.f32 %v232_v41, %v231_v38  ;;  %v245_v51 = vsel %vm81_vm1, %v221_v33, 0.0 }
  0x53   :  { %v135_v52 = vrot.slane %v134_v43, 1  ;;  %v141_v53 = vadd.f32 %v140_v44, %v139_v36  ;;  %v227_v54 = vrot.slane %v226_v45, 2  ;;  %v240_v55 = vadd.f32 %v239_v46, %v238_v42 }
  0x54   :  { %v149_v56 = vrot.slane %v148_v47, 1  ;;  %v155_v58 = vadd.f32 %v154_v48, %v153_v40  ;;  %v234_v60 = vrot.slane %v233_v49, 2  ;;  %v246_v61 = vrot.slane %v245_v51, 4 }
  0x55   :  { %v136_v62 = vadd.f32 %v135_v52, %v134_v43  ;;  %v142_v63 = vrot.slane %v141_v53, 1  ;;  %v228_v6 = vadd.f32 %v227_v54, %v226_v45  ;;  %v241_v14 = vrot.slane %v240_v55, 2 }
  0x56   :  { %v150_v15 = vadd.f32 %v149_v56, %v148_v47  ;;  %v156_v17 = vrot.slane %v155_v58, 1  ;;  %v235_v18 = vadd.f32 %v234_v60, %v233_v49  ;;  %v247_v21 = vadd.f32 %v246_v61, %v245_v51 }
  0x57   :  { %v143_v24 = vadd.f32 %v142_v63, %v141_v53  ;;  %516 = vlog2.f32 %v136_v62  ;;  %v229_v25 = vrot.slane %v228_v6, 1  ;;  %v242_v12 = vadd.f32 %v241_v14, %v240_v55 }
  0x58   :  { %v157_v28 = vadd.f32 %v156_v17, %v155_v58  ;;  %518 = vlog2.f32 %v150_v15  ;;  %v236_v29 = vrot.slane %v235_v18, 1  ;;  %v248_v30 = vrot.slane %v247_v21, 2 }
  0x59   :  { %520 = vlog2.f32 %v143_v24  ;;  %v230_v31 = vadd.f32 %v229_v25, %v228_v6  ;;  %v243_v32 = vrot.slane %v242_v12, 1  ;;  %v274_v33 = vmul.f32 %v513_v23, %v272_v0 }
  0x5a   :  { %522 = vlog2.f32 %v157_v28  ;;  %v237_v34 = vadd.f32 %v236_v29, %v235_v18  ;;  %v249_v35 = vadd.f32 %v248_v30, %v247_v21  ;;  %v275_v36 = vmul.f32 %v515_v11, %v273_v16  ;;  %v387_v18 = vld [vmem:[#allocation3] sm:$0x3] }
  0x5b   :  { %v244_v37 = vadd.f32 %v243_v32, %v242_v12  ;;  %524 = vlog2.f32 %v230_v31  ;;  %v278_v38 = vcombine.high %v274_v33, %v274_v33  ;;  %v282_v39 = vsel %vm81_vm1, %v274_v33, 0.0 }
  0x5c   :  { %v250_v40 = vrot.slane %v249_v35, 1  ;;  %526 = vlog2.f32 %v237_v34  ;;  %v279_v41 = vcombine.high %v275_v36, %v275_v36  ;;  %v283_v42 = vrot.slane %v282_v39, 4 }
  0x5d   :  { %528 = vlog2.f32 %v244_v37  ;;  %v289_v7 = vsel %vm81_vm1, %v278_v38, 0.0  ;;  %v296_v9 = vsel %vm81_vm1, %v275_v36, 0.0  ;;  %v389_v0 = vadd.f32 %v772_v26, %v769_v22 }
  0x5e   :  { %v251_v23 = vadd.f32 %v250_v40, %v249_v35  ;;  %530 = vrcp.f32 %v230_v31  ;;  %v284_v8 = vadd.f32 %v283_v42, %v282_v39  ;;  %v290_v10 = vrot.slane %v289_v7, 4 }
  0x5f   :  { %532 = vrcp.f32 %v237_v34  ;;  %v297_v16 = vrot.slane %v296_v9, 4  ;;  %v303_v11 = vsel %vm81_vm1, %v279_v41, 0.0  ;;  %v392_v43 = vcombine.low %v774_v27, %v389_v0 }
  0x60   :  { %534 = vlog2.f32 %v251_v23  ;;  %v285_v44 = vrot.slane %v284_v8, 2  ;;  %v291_v45 = vadd.f32 %v290_v10, %v289_v7  ;;  %v304_v46 = vrot.slane %v303_v11, 4 }
  0x61   :  { %v517_v47 = vpop.eup %516  ;;  %536 = vrcp.f32 %v244_v37  ;;  %v298_v48 = vadd.f32 %v297_v16, %v296_v9  ;;  %v399_v49 = vrot.slane %v392_v43, %v761_v2 }
  0x62   :  { %v519_v22 = vpop.eup %518  ;;  %v159_v26 = vmul.f32 0.6931472, %v517_v47  ;;  %538 = vrcp.f32 %v251_v23  ;;  %v286_v51 = vadd.f32 %v285_v44, %v284_v8  ;;  %v292_v52 = vrot.slane %v291_v45, 2 }
  0x63   :  { %v521_v53 = vpop.eup %520  ;;  %v163_v54 = vmul.f32 0.6931472, %v519_v22  ;;  %v299_v55 = vrot.slane %v298_v48, 2  ;;  %v305_v56 = vadd.f32 %v304_v46, %v303_v11  ;;  %v406_v62 = vrot.slane %v399_v49, %v761_v2 }
  0x64   :  { %v523_v58 = vpop.eup %522  ;;  %v161_v27 = vmul.f32 0.6931472, %v521_v53  ;;  %v287_v60 = vrot.slane %v286_v51, 1  ;;  %v293_v61 = vadd.f32 %v292_v52, %v291_v45  ;;  %v166_v14 = vadd.f32 %v159_v26, %v725_v57 }
  0x65   :  { %v525_v63 = vpop.eup %524  ;;  %v165_v6 = vmul.f32 0.6931472, %v523_v58  ;;  %v300_v15 = vadd.f32 %v299_v55, %v298_v48  ;;  %v306_v17 = vrot.slane %v305_v56, 2  ;;  %v168_v24 = vadd.f32 %v163_v54, %v727_v59 }
  0x66   :  { %v527_v21 = vpop.eup %526  ;;  %v253_v25 = vmul.f32 0.6931472, %v525_v63  ;;  %v288_v12 = vadd.f32 %v287_v60, %v286_v51  ;;  %v294_v28 = vrot.slane %v293_v61, 1  ;;  %v167_v30 = vadd.f32 %v161_v27, %v729_v3  ;;  %v360_v51 = vld [vmem:[#allocation2] sm:$0x3] }
  0x67   :  { %v529_v29 = vpop.eup %528  ;;  %v255_v31 = vmul.f32 0.6931472, %v527_v21  ;;  %v301_v32 = vrot.slane %v300_v15, 1  ;;  %v307_v33 = vadd.f32 %v306_v17, %v305_v56  ;;  %v408_v37 = vadd.f32 %v406_v62, %v387_v18 }
  0x68   :  { %v531_v34 = vpop.eup %530  ;;  %v257_v35 = vmul.f32 0.6931472, %v529_v29  ;;  %v260_v36 = vadd.f32 %v253_v25, %v733_v5  ;;  %v295_v57 = vadd.f32 %v294_v28, %v293_v61  ;;  %v169_v7 = vadd.f32 %v165_v6, %v731_v4 }
  0x69   :  { %v533_v38 = vpop.eup %532  ;;  %v261_v39 = vadd.f32 %v255_v31, %v741_v19  ;;  %v302_v40 = vadd.f32 %v301_v32, %v300_v15  ;;  %v308_v59 = vrot.slane %v307_v33, 1  ;;  %v310_v41 = vmul.f32 %v531_v34, %v288_v12  ;;  %409 = vst.msk [vmem:[#allocation3] sm:$0x3] %vm689_vm0, %v408_v37 }
  0x6a   :  { %v535_v42 = vpop.eup %534  ;;  %v262_v3 = vadd.f32 %v257_v35, %v735_v13  ;;  %v314_v9 = vsub.f32 %v166_v14, %v260_v36  ;;  %v311_v8 = vmul.f32 %v533_v38, %v295_v57  ;;  %v420_v55 = vsub.s32 1, %v758_v50 }
  0x6b   :  { %v537_v0 = vpop.eup %536  ;;  %v259_v23 = vmul.f32 0.6931472, %v535_v42  ;;  %v309_v5 = vadd.f32 %v308_v59, %v307_v33  ;;  %v315_v10 = vsub.f32 %v167_v30, %v261_v39 }
  0x6c   :  { %v539_v16 = vpop.eup %538  ;;  %v312_v11 = vmul.f32 %v537_v0, %v302_v40  ;;  %v316_v19 = vsub.f32 %v168_v24, %v262_v3  ;;  %v318_v45 = vadd.f32 %v314_v9, %v310_v41 }
  0x6d   :  { %v263_v43 = vadd.f32 %v259_v23, %v743_v20  ;;  %v313_v44 = vmul.f32 %v539_v16, %v309_v5  ;;  %v319_v47 = vadd.f32 %v315_v10, %v311_v8  ;;  %v416_v20 = vsub.s32 0, %v758_v50 }
  0x6e   :  { %v320_v46 = vadd.f32 %v316_v19, %v312_v11 }
  0x6f   :  { %v317_v4 = vsub.f32 %v169_v7, %v263_v43 }
  0x70   :  { %v361_v48 = vadd.f32 %v320_v46, %v318_v45  ;;  %v440_v54 = vld [vmem:[#allocation3] sm:$0x3] }
  0x71   :  { %v321_v13 = vadd.f32 %v317_v4, %v313_v44  ;;  %v445_v56 = vrot.slane %v440_v54, %v416_v20  ;;  %v449_v58 = vrot.slane %v440_v54, %v420_v55 }
  0x73   :  { %v362_v49 = vadd.f32 %v321_v13, %v319_v47  ;;  %v452_v6 = vsel %vm424_vm2, %v445_v56, 0.0  ;;  %v453_v14 = vsel %vm424_vm2, %v449_v58, 0.0 }
  0x74   :  { %v454_v15 = vadd.f32 %v453_v14, %v452_v6 }
  0x75   :  { %v365_v22 = vcombine.low %v361_v48, %v362_v49 }
  0x77   :  { %v372_v26 = vrot.slane %v365_v22, %v761_v2 }
  0x79   :  { %v379_v52 = vrot.slane %v372_v26, %v761_v2 }
  0x7b   :  { %v381_v53 = vadd.f32 %v379_v52, %v360_v51 }
  0x7d   :  { %386 = vst.msk [vmem:[#allocation2] sm:$0x3] %vm689_vm0, %v381_v53 }
  0x84   :  { %v412_v27 = vld [vmem:[#allocation2] sm:$0x3] }
  0x85   :  { %v417_v60 = vrot.slane %v412_v27, %v416_v20  ;;  %v421_v61 = vrot.slane %v412_v27, %v420_v55 }
  0x87   :  { %v425_v62 = vsel %vm424_vm2, %v417_v60, 0.0  ;;  %v426_v63 = vsel %vm424_vm2, %v421_v61, 0.0 }
  0x88   :  { %v427_v2 = vadd.f32 %v426_v63, %v425_v62 }
  0x8a   :  { %428 = vadd.xlane.f32.xlu0 %v427_v2 }
  0x8e   :  { %455 = vadd.xlane.f32.xlu0 %v454_v15 }
 0x117   :  { %v429_v1 = vpop.xlane.xlu0 %428 }
 0x118   :  { %v430_v17 = vrot.slane %v429_v1, 4 }
 0x11a   :  { %v431_v18 = vadd.f32 %v430_v17, %v429_v1 }
 0x11b   :  { %v456_v21 = vpop.xlane.xlu0 %455 }
 0x11c   :  { %v432_v24 = vrot.slane %v431_v18, 2  ;;  %v457_v50 = vrot.slane %v456_v21, 4 }
 0x11e   :  { %v458_v25 = vadd.f32 %v457_v50, %v456_v21  ;;  %v433_v12 = vadd.f32 %v432_v24, %v431_v18 }
 0x120   :  { %v459_v28 = vrot.slane %v458_v25, 2  ;;  %v434_v29 = vrot.slane %v433_v12, 1 }
 0x122   :  { %v460_v30 = vadd.f32 %v459_v28, %v458_v25  ;;  %v435_v31 = vadd.f32 %v434_v29, %v433_v12 }
 0x124   :  { %496 = vpush %v435_v31  ;;  %v461_v32 = vrot.slane %v460_v30, 1 }
 0x126   :  { %v462_v33 = vadd.f32 %v461_v32, %v460_v30 }
 0x128   :  { %498 = vpush %v462_v33 }
 0x155   :  { %s497_s11 = spop %496 }
 0x156   :  { %v437_v34 = vstv %s497_s11 }
 0x157   :  { %439 = vst.msk [vmem:[#allocation9] sm:$0x1] %vm438_vm3, %v437_v34 }
 0x158   :  { %595 = shalt.err (!%p592_p6)
}
 0x159   :  { %s596_s18 = scalar_lea.hbm %s840_s2, 16 }
 0x15a   :  { %p597_p7 = scmp.ne.s32.totalorder %s840_s2, %s596_s18  ;;  %p600_p8 = scmp.lt.u32.totalorder %s596_s18, %s840_s2 }
 0x15c   :  { %p602_p9 = pnand %p600_p8, %p597_p7 }
 0x15e   :  { %605 = shalt.err (!%p602_p9)
}
 0x15f   :  { %475 = dma.vmem_to_hbm [thread:$0]  %s473_s10, 16, %s840_s2, [#allocation6]  }
 0x160   :  { %s499_s25 = spop %498  ;;  %s606_s26 = scalar_lea.vmem %s483_s13, 16 }
 0x161   :  { %v464_v35 = vstv %s499_s25  ;;  %p607_p10 = scmp.ne.s32.totalorder %s483_s13, %s606_s26  ;;  %s610_s27 = scalar_lea.vmem %s483_s13, 32 }
 0x162   :  { %465 = vst.msk [vmem:[#allocation10] sm:$0x1] %vm438_vm3, %v464_v35  ;;  %p611_p11 = scmp.lt.s32.totalorder %s483_s13, %s483_s13  ;;  %p612_p12 = scmp.lt.s32.totalorder %s610_s27, %s606_s26 }
 0x164   :  { %p613_p13 = por %p612_p12, %p611_p11 }
 0x166   :  { %p614_p0 = pnand %p613_p13, %p607_p10 }
 0x168   :  { %617 = shalt.err (!%p614_p0)
}
 0x169   :  { %s618_s30 = scalar_lea.hbm %s841_s3, 16 }
 0x16a   :  { %p619_p1 = scmp.ne.s32.totalorder %s841_s3, %s618_s30  ;;  %p622_p2 = scmp.lt.u32.totalorder %s618_s30, %s841_s3 }
 0x16c   :  { %p624_p3 = pnand %p622_p2, %p619_p1 }
 0x16e   :  { %627 = shalt.err (!%p624_p3)
}
 0x16f   :  { %485 = dma.vmem_to_hbm [thread:$0]  %s483_s13, 16, %s841_s3, [#allocation11]  }
 0x170   :  { %632 = dma.done.wait [#allocation6], 16  }
 0x171   :  { %633 = vsyncadd [#allocation6], 4294967280 }
 0x172   :  { %634 = dma.done.wait [#allocation11], 16  }
 0x173   :  { %635 = vsyncadd [#allocation11], 4294967280 }
 0x174   :  { %492 = vsyncpa [#allocation5], 1 }
 0x175   :  { %493 = vsyncpa [#allocation8], 1 }
 0x176   :  { %494 = vsyncpa [#allocation6], 1 }
 0x177   :  { %495 = vsyncpa [#allocation11], 1 }

</bundles_post_ra>
